<compile_context>
chip_gen: v5e
topology: v5e:2x2
jax: 0.10.0
libtpu: 0.0.40
codegen_flags: <defaults>
</compile_context>

<pallas_src>
import functools

import jax
import jax.numpy as jnp
from jax import lax
from jax.experimental import pallas as pl
from jax.experimental.pallas import tpu as pltpu


def _round_up(n, m):
    return (n + m - 1) // m * m


def _tpu_budgets():
    """(per-step working-set budget, vmem_limit_bytes, prefer_split_grid)."""
    try:
        kind = jax.devices()[0].device_kind.lower()
    except Exception:
        kind = ""
    if "v7" in kind or "tpu" not in kind:
        # v7x has 64 MiB VMEM per TensorCore (and 2 TCs) -> stay conservative,
        # but keep >=2 grid steps so both cores get work. Unknown backends also
        # take the conservative path.
        return 22 << 20, 48 << 20, True
    # v5e / v6e: 128 MiB physical VMEM -> large tiles amortize per-step
    # DMA/loop overhead and push the (HBM-bound) kernel toward roofline.
    return 40 << 20, 96 << 20, False


def _pick_batch_tile(B, F, H, max_tile_rows, budget_bytes, prefer_split):
    """Largest 16-aligned batch tile whose pipelined working set fits the budget."""
    # Resident (constant-index) weights still get double-buffered by the
    # pipeline; charge them against the same budget.
    weight_bytes = 2 * (2 * F * H * 2) + (64 << 10)
    avail = max(budget_bytes - weight_bytes, 4 << 20)
    # Per row: 2-buffered f32 x input + 2-buffered f32 dec output + in-kernel
    # bf16 copy of x + ~4 F-wide f32 temps in flight.
    per_row = F * (2 * 4 + 2 * 4 + 2 + 4 * 4) + 512
    tb = max(16, min(max_tile_rows, (avail // per_row) // 16 * 16))
    if prefer_split and B > 32:
        # Keep at least 2 grid steps so both v7x TensorCores are busy.
        tb = min(tb, _round_up(pl.cdiv(B, 2), 16))
    if tb >= B:
        return B  # single block == full batch (full-dim exception, no padding)
    return tb


def _dagmm_kernel(x_ref,
                  we1_ref, be1_ref, we2_ref, be2_ref,      # encoder
                  wd1_ref, bd1_ref, wd2_ref, bd2_ref,      # decoder
                  wz1_ref, bz1_ref, wz2_ref, bz2_ref,      # estimation net
                  dec_ref, z_ref, gamma_ref):
    x = x_ref[...]                           # (TB, F) f32, straight from HBM
    xb = x.astype(jnp.bfloat16)              # bf16 only as the MXU operand

    # ---- autoencoder encoder: Linear(F,H) -> Tanh -> Linear(H, enc_dim) ----
    h_e = jnp.tanh(jnp.dot(xb, we1_ref[...],
                           preferred_element_type=jnp.float32) + be1_ref[...])
    enc = jnp.dot(h_e, we2_ref[...],
                  preferred_element_type=jnp.float32) + be2_ref[...]

    # ---- decoder: Linear(enc_dim,H) -> Tanh -> Linear(H,F) ----
    h_d = jnp.tanh(jnp.dot(enc, wd1_ref[...],
                           preferred_element_type=jnp.float32) + bd1_ref[...])
    dec = jnp.dot(h_d.astype(jnp.bfloat16), wd2_ref[...],
                  preferred_element_type=jnp.float32) + bd2_ref[...]
    dec_ref[...] = dec

    # ---- reconstruction features (f32 per-row reductions over F) ----
    xx = jnp.sum(x * x, axis=1, keepdims=True)
    dd = jnp.sum(dec * dec, axis=1, keepdims=True)
    xd = jnp.sum(x * dec, axis=1, keepdims=True)
    diff = x - dec                 # explicit diff kept: avoids cancellation when x ~= dec
    ee = jnp.sum(diff * diff, axis=1, keepdims=True)

    # F.cosine_similarity: each norm clamped to eps=1e-8 (max(sqrt(a),e) == sqrt(max(a,e^2)))
    rec_cos = xd * lax.rsqrt(jnp.maximum(xx, 1e-16)) * lax.rsqrt(jnp.maximum(dd, 1e-16))
    # relative_euclidean_distance: ||x - dec|| / clamp(||x||, min=1e-10)
    rec_euc = jnp.sqrt(ee) * lax.rsqrt(jnp.maximum(xx, 1e-20))

    # ---- z = concat([enc, rec_euc, rec_cos], 1): pure output write (no reload) ----
    enc_dim = enc.shape[1]
    z_ref[:, :enc_dim] = enc
    z_ref[:, enc_dim:enc_dim + 1] = rec_euc
    z_ref[:, enc_dim + 1:enc_dim + 2] = rec_cos

    # ---- estimation net fed from register values (no z store->load round trip) ----
    # Linear(latent,10) -> Tanh -> Dropout(eval) -> Linear(10,n_gmm) -> Softmax(dim=1)
    wz1 = wz1_ref[...]
    pre = jnp.dot(enc, wz1[:enc_dim, :], preferred_element_type=jnp.float32)
    pre = pre + rec_euc * wz1[enc_dim:enc_dim + 1, :]
    pre = pre + rec_cos * wz1[enc_dim + 1:enc_dim + 2, :]
    e1 = jnp.tanh(pre + bz1_ref[...])
    # TODO(synk): Dropout(p=0.5) implemented in eval mode (identity); no RNG mask applied.
    logits = jnp.dot(e1, wz2_ref[...],
                     preferred_element_type=jnp.float32) + bz2_ref[...]
    m = jnp.max(logits, axis=1, keepdims=True)
    ex = jnp.exp(logits - m)
    gamma_ref[...] = ex / jnp.sum(ex, axis=1, keepdims=True)   # exact normalization


@functools.partial(jax.jit, static_argnames=("enc_dim", "max_tile_rows"))
def dagmm_forward(x, params, *, enc_dim, max_tile_rows=1024):
    """Runs the DAGMM forward pass. Returns (enc, dec, z, gamma)."""
    B, F = x.shape
    H = params["we1"].shape[1]
    latent_dim = enc_dim + 2
    n_gmm = params["wz2"].shape[1]

    budget, vmem_limit, prefer_split = _tpu_budgets()
    TB = _pick_batch_tile(B, F, H, max_tile_rows, budget, prefer_split)

    # bf16 operands for the two wide (F-sized) matmuls: weights are tiny and
    # resident, so casting them once in the wrapper is negligible. x stays f32.
    we1_bf = params["we1"].astype(jnp.bfloat16)
    wd2_bf = params["wd2"].astype(jnp.bfloat16)

    weights = (we1_bf, params["be1"], params["we2"], params["be2"],
               params["wd1"], params["bd1"], wd2_bf, params["bd2"],
               params["wz1"], params["bz1"], params["wz2"], params["bz2"])

    grid = (pl.cdiv(B, TB),)                 # partial final block: OOB rows are dropped
    x_spec = pl.BlockSpec((TB, F), lambda i: (i, 0))
    # Constant block index -> each weight/bias is DMA'd once and stays resident
    # in VMEM across all grid steps.
    w_specs = [pl.BlockSpec(w.shape, lambda i: (0, 0)) for w in weights]

    dec, z, gamma = pl.pallas_call(
        _dagmm_kernel,
        grid=grid,
        out_shape=(
            jax.ShapeDtypeStruct((B, F), jnp.float32),           # dec
            jax.ShapeDtypeStruct((B, latent_dim), jnp.float32),  # z
            jax.ShapeDtypeStruct((B, n_gmm), jnp.float32),       # gamma
        ),
        in_specs=[x_spec] + w_specs,
        out_specs=(
            pl.BlockSpec((TB, F), lambda i: (i, 0)),
            pl.BlockSpec((TB, latent_dim), lambda i: (i, 0)),
            pl.BlockSpec((TB, n_gmm), lambda i: (i, 0)),
        ),
        compiler_params=pltpu.CompilerParams(
            dimension_semantics=("parallel",),   # shard batch tiles across TCs (v7x)
            vmem_limit_bytes=vmem_limit,
        ),
    )(x, *weights)

    enc = z[:, :enc_dim]                     # tiny (B, enc_dim) view-copy
    return enc, dec, z, gamma


def _reference_forward(x, params, enc_dim):
    """Pure-JAX reference mirroring the kernel's precision choices
    (bf16 operands on the two wide matmuls, f32 accumulation / reductions)."""
    bf = jnp.bfloat16
    hi = lax.Precision.HIGHEST

    h_e = jnp.tanh(jnp.dot(x.astype(bf), params["we1"].astype(bf),
                           preferred_element_type=jnp.float32) + params["be1"])
    enc = jnp.dot(h_e, params["we2"], precision=hi,
                  preferred_element_type=jnp.float32) + params["be2"]
    h_d = jnp.tanh(jnp.dot(enc, params["wd1"], precision=hi,
                           preferred_element_type=jnp.float32) + params["bd1"])
    dec = jnp.dot(h_d.astype(bf), params["wd2"].astype(bf),
                  preferred_element_type=jnp.float32) + params["bd2"]

    x_norm = jnp.linalg.norm(x, axis=1)
    d_norm = jnp.linalg.norm(dec, axis=1)
    rec_cos = jnp.sum(x * dec, axis=1) / (jnp.maximum(x_norm, 1e-8) *
                                          jnp.maximum(d_norm, 1e-8))
    rec_euc = jnp.linalg.norm(x - dec, axis=1) / jnp.maximum(x_norm, 1e-10)

    z = jnp.concatenate([enc, rec_euc[:, None], rec_cos[:, None]], axis=1)
    e1 = jnp.tanh(jnp.dot(z, params["wz1"], precision=hi) + params["bz1"])
    gamma = jax.nn.softmax(jnp.dot(e1, params["wz2"], precision=hi) + params["bz2"], axis=1)
    return enc, dec, z, gamma


def _linear_init(key, fan_in, fan_out):
    """PyTorch-Linear-style init: U(-1/sqrt(fan_in), 1/sqrt(fan_in))."""
    kw, kb = jax.random.split(key)
    bound = 1.0 / jnp.sqrt(jnp.float32(fan_in))
    w = jax.random.uniform(kw, (fan_in, fan_out), jnp.float32, -bound, bound)
    b = jax.random.uniform(kb, (1, fan_out), jnp.float32, -bound, bound)
    return w, b


def make_params(key, F, H, enc_dim, n_gmm):
    latent_dim = enc_dim + 2
    keys = jax.random.split(key, 6)
    we1, be1 = _linear_init(keys[0], F, H)
    we2, be2 = _linear_init(keys[1], H, enc_dim)
    wd1, bd1 = _linear_init(keys[2], enc_dim, H)
    wd2, bd2 = _linear_init(keys[3], H, F)
    wz1, bz1 = _linear_init(keys[4], latent_dim, 10)
    wz2, bz2 = _linear_init(keys[5], 10, n_gmm)
    return dict(we1=we1, be1=be1, we2=we2, be2=be2,
                wd1=wd1, bd1=bd1, wd2=wd2, bd2=bd2,
                wz1=wz1, bz1=bz1, wz2=wz2, bz2=bz2)


if __name__ == "__main__":
    # Small but deliberately awkward shapes: B=50 with max_tile_rows=16 forces a
    # 4-step batch grid whose last block is partial; F=200 exercises the
    # non-128-aligned "block == full dim" path.
    B, F, H = 50, 200, 32
    ENC_DIM, N_GMM = 6, 4         # latent_dim = ENC_DIM + 2 = 8

    key = jax.random.PRNGKey(0)
    kx, kp = jax.random.split(key)
    x = jax.random.normal(kx, (B, F), jnp.float32)
    params = make_params(kp, F, H, ENC_DIM, N_GMM)

    enc, dec, z, gamma = dagmm_forward(x, params, enc_dim=ENC_DIM, max_tile_rows=16)
    jax.block_until_ready((enc, dec, z, gamma))

    # sanity check against pure-JAX reference
    enc_r, dec_r, z_r, gamma_r = _reference_forward(x, params, ENC_DIM)
    assert enc.shape == (B, ENC_DIM)
    assert dec.shape == (B, F)
    assert z.shape == (B, ENC_DIM + 2)
    assert gamma.shape == (B, N_GMM)
    for got, want in ((enc, enc_r), (dec, dec_r), (z, z_r), (gamma, gamma_r)):
        assert jnp.all(jnp.isfinite(got)), "non-finite output"
        assert jnp.allclose(got, want, atol=1e-2, rtol=1e-2), "mismatch vs reference"
    assert jnp.allclose(jnp.sum(gamma, axis=1), 1.0, atol=1e-3)

    print("KERNEL_OK")
</pallas_src>

<mosaic_0001>
module attributes {stable_mosaic.version = 11 : i64} {
  func.func @_dagmm_kernel(%arg0: i32, %arg1: memref<16x200xf32, #tpu.memory_space<vmem>>, %arg2: memref<200x32xbf16, #tpu.memory_space<vmem>>, %arg3: memref<1x32xf32, #tpu.memory_space<vmem>>, %arg4: memref<32x6xf32, #tpu.memory_space<vmem>>, %arg5: memref<1x6xf32, #tpu.memory_space<vmem>>, %arg6: memref<6x32xf32, #tpu.memory_space<vmem>>, %arg7: memref<1x32xf32, #tpu.memory_space<vmem>>, %arg8: memref<32x200xbf16, #tpu.memory_space<vmem>>, %arg9: memref<1x200xf32, #tpu.memory_space<vmem>>, %arg10: memref<8x10xf32, #tpu.memory_space<vmem>>, %arg11: memref<1x10xf32, #tpu.memory_space<vmem>>, %arg12: memref<10x4xf32, #tpu.memory_space<vmem>>, %arg13: memref<1x4xf32, #tpu.memory_space<vmem>>, %arg14: memref<16x200xf32, #tpu.memory_space<vmem>>, %arg15: memref<16x8xf32, #tpu.memory_space<vmem>>, %arg16: memref<16x4xf32, #tpu.memory_space<vmem>>) attributes {dimension_semantics = [#tpu.dimension_semantics<parallel>], iteration_bounds = array<i64: 4>, scalar_prefetch = 0 : i64, scratch_operands = 0 : i64, tpu.core_type = #tpu.core_type<tc>, window_params = [{transform_indices = @transform_0, window_bounds = array<i64: 16, 200>}, {pipeline_mode = #tpu.pipeline_mode<synchronous>, transform_indices = @transform_1, window_bounds = array<i64: 200, 32>}, {pipeline_mode = #tpu.pipeline_mode<synchronous>, transform_indices = @transform_2, window_bounds = array<i64: 1, 32>}, {pipeline_mode = #tpu.pipeline_mode<synchronous>, transform_indices = @transform_3, window_bounds = array<i64: 32, 6>}, {pipeline_mode = #tpu.pipeline_mode<synchronous>, transform_indices = @transform_4, window_bounds = array<i64: 1, 6>}, {pipeline_mode = #tpu.pipeline_mode<synchronous>, transform_indices = @transform_5, window_bounds = array<i64: 6, 32>}, {pipeline_mode = #tpu.pipeline_mode<synchronous>, transform_indices = @transform_6, window_bounds = array<i64: 1, 32>}, {pipeline_mode = #tpu.pipeline_mode<synchronous>, transform_indices = @transform_7, window_bounds = array<i64: 32, 200>}, {pipeline_mode = #tpu.pipeline_mode<synchronous>, transform_indices = @transform_8, window_bounds = array<i64: 1, 200>}, {pipeline_mode = #tpu.pipeline_mode<synchronous>, transform_indices = @transform_9, window_bounds = array<i64: 8, 10>}, {pipeline_mode = #tpu.pipeline_mode<synchronous>, transform_indices = @transform_10, window_bounds = array<i64: 1, 10>}, {pipeline_mode = #tpu.pipeline_mode<synchronous>, transform_indices = @transform_11, window_bounds = array<i64: 10, 4>}, {pipeline_mode = #tpu.pipeline_mode<synchronous>, transform_indices = @transform_12, window_bounds = array<i64: 1, 4>}, {transform_indices = @transform_13, window_bounds = array<i64: 16, 200>}, {transform_indices = @transform_14, window_bounds = array<i64: 16, 8>}, {transform_indices = @transform_15, window_bounds = array<i64: 16, 4>}]} {
    %c0 = arith.constant 0 : index
    %c0_0 = arith.constant 0 : index
    %0 = vector.load %arg1[%c0, %c0_0] : memref<16x200xf32, #tpu.memory_space<vmem>>, vector<16x200xf32>
    %1 = arith.truncf %0 : vector<16x200xf32> to vector<16x200xbf16>
    %c0_1 = arith.constant 0 : index
    %c0_2 = arith.constant 0 : index
    %2 = vector.load %arg2[%c0_1, %c0_2] : memref<200x32xbf16, #tpu.memory_space<vmem>>, vector<200x32xbf16>
    %cst = arith.constant dense<0.000000e+00> : vector<16x32xf32>
    %3 = tpu.matmul %1, %2, %cst {dimension_numbers = #tpu.dot_dimension_numbers<[1], [0], [0], [1], [0, 0, 1, 1], [], []>} : vector<16x200xbf16>, vector<200x32xbf16>, vector<16x32xf32> -> vector<16x32xf32>
    %c0_3 = arith.constant 0 : index
    %c0_4 = arith.constant 0 : index
    %4 = vector.load %arg3[%c0_3, %c0_4] : memref<1x32xf32, #tpu.memory_space<vmem>>, vector<1x32xf32>
    %5 = vector.broadcast %4 : vector<1x32xf32> to vector<16x32xf32>
    %6 = arith.addf %3, %5 : vector<16x32xf32>
    %7 = math.tanh %6 : vector<16x32xf32>
    %c0_5 = arith.constant 0 : index
    %c0_6 = arith.constant 0 : index
    %8 = vector.load %arg4[%c0_5, %c0_6] : memref<32x6xf32, #tpu.memory_space<vmem>>, vector<32x6xf32>
    %cst_7 = arith.constant dense<0.000000e+00> : vector<16x6xf32>
    %9 = tpu.matmul %7, %8, %cst_7 {dimension_numbers = #tpu.dot_dimension_numbers<[1], [0], [0], [1], [0, 0, 1, 1], [], []>} : vector<16x32xf32>, vector<32x6xf32>, vector<16x6xf32> -> vector<16x6xf32>
    %c0_8 = arith.constant 0 : index
    %c0_9 = arith.constant 0 : index
    %10 = vector.load %arg5[%c0_8, %c0_9] : memref<1x6xf32, #tpu.memory_space<vmem>>, vector<1x6xf32>
    %11 = vector.broadcast %10 : vector<1x6xf32> to vector<16x6xf32>
    %12 = arith.addf %9, %11 : vector<16x6xf32>
    %c0_10 = arith.constant 0 : index
    %c0_11 = arith.constant 0 : index
    %13 = vector.load %arg6[%c0_10, %c0_11] : memref<6x32xf32, #tpu.memory_space<vmem>>, vector<6x32xf32>
    %cst_12 = arith.constant dense<0.000000e+00> : vector<16x32xf32>
    %14 = tpu.matmul %12, %13, %cst_12 {dimension_numbers = #tpu.dot_dimension_numbers<[1], [0], [0], [1], [0, 0, 1, 1], [], []>} : vector<16x6xf32>, vector<6x32xf32>, vector<16x32xf32> -> vector<16x32xf32>
    %c0_13 = arith.constant 0 : index
    %c0_14 = arith.constant 0 : index
    %15 = vector.load %arg7[%c0_13, %c0_14] : memref<1x32xf32, #tpu.memory_space<vmem>>, vector<1x32xf32>
    %16 = vector.broadcast %15 : vector<1x32xf32> to vector<16x32xf32>
    %17 = arith.addf %14, %16 : vector<16x32xf32>
    %18 = math.tanh %17 : vector<16x32xf32>
    %19 = arith.truncf %18 : vector<16x32xf32> to vector<16x32xbf16>
    %c0_15 = arith.constant 0 : index
    %c0_16 = arith.constant 0 : index
    %20 = vector.load %arg8[%c0_15, %c0_16] : memref<32x200xbf16, #tpu.memory_space<vmem>>, vector<32x200xbf16>
    %cst_17 = arith.constant dense<0.000000e+00> : vector<16x200xf32>
    %21 = tpu.matmul %19, %20, %cst_17 {dimension_numbers = #tpu.dot_dimension_numbers<[1], [0], [0], [1], [0, 0, 1, 1], [], []>} : vector<16x32xbf16>, vector<32x200xbf16>, vector<16x200xf32> -> vector<16x200xf32>
    %c0_18 = arith.constant 0 : index
    %c0_19 = arith.constant 0 : index
    %22 = vector.load %arg9[%c0_18, %c0_19] : memref<1x200xf32, #tpu.memory_space<vmem>>, vector<1x200xf32>
    %23 = vector.broadcast %22 : vector<1x200xf32> to vector<16x200xf32>
    %24 = arith.addf %21, %23 : vector<16x200xf32>
    %c0_20 = arith.constant 0 : index
    %c0_21 = arith.constant 0 : index
    %25 = vector.load %arg14[%c0_20, %c0_21] : memref<16x200xf32, #tpu.memory_space<vmem>>, vector<16x200xf32>
    tpu.vector_store %arg14[%c0_20, %c0_21], %24 {strides = array<i32>} : memref<16x200xf32, #tpu.memory_space<vmem>>, vector<16x200xf32>,
    %26 = arith.mulf %0, %0 : vector<16x200xf32>
    %cst_22 = arith.constant dense<0.000000e+00> : vector<16xf32>
    %27 = vector.multi_reduction <add>, %26, %cst_22 [1] : vector<16x200xf32> to vector<16xf32>
    %28 = vector.shape_cast %27 : vector<16xf32> to vector<16x1xf32>
    %29 = arith.mulf %24, %24 : vector<16x200xf32>
    %cst_23 = arith.constant dense<0.000000e+00> : vector<16xf32>
    %30 = vector.multi_reduction <add>, %29, %cst_23 [1] : vector<16x200xf32> to vector<16xf32>
    %31 = vector.shape_cast %30 : vector<16xf32> to vector<16x1xf32>
    %32 = arith.mulf %0, %24 : vector<16x200xf32>
    %cst_24 = arith.constant dense<0.000000e+00> : vector<16xf32>
    %33 = vector.multi_reduction <add>, %32, %cst_24 [1] : vector<16x200xf32> to vector<16xf32>
    %34 = vector.shape_cast %33 : vector<16xf32> to vector<16x1xf32>
    %35 = arith.subf %0, %24 : vector<16x200xf32>
    %36 = arith.mulf %35, %35 : vector<16x200xf32>
    %cst_25 = arith.constant dense<0.000000e+00> : vector<16xf32>
    %37 = vector.multi_reduction <add>, %36, %cst_25 [1] : vector<16x200xf32> to vector<16xf32>
    %38 = vector.shape_cast %37 : vector<16xf32> to vector<16x1xf32>
    %cst_26 = arith.constant 1.000000e-16 : f32
    %39 = vector.broadcast %cst_26 : f32 to vector<16x1xf32>
    %40 = arith.maximumf %28, %39 : vector<16x1xf32>
    %41 = math.rsqrt %40 : vector<16x1xf32>
    %42 = arith.mulf %34, %41 : vector<16x1xf32>
    %cst_27 = arith.constant 1.000000e-16 : f32
    %43 = vector.broadcast %cst_27 : f32 to vector<16x1xf32>
    %44 = arith.maximumf %31, %43 : vector<16x1xf32>
    %45 = math.rsqrt %44 : vector<16x1xf32>
    %46 = arith.mulf %42, %45 : vector<16x1xf32>
    %47 = math.sqrt %38 : vector<16x1xf32>
    %cst_28 = arith.constant 9.99999968E-21 : f32
    %48 = vector.broadcast %cst_28 : f32 to vector<16x1xf32>
    %49 = arith.maximumf %28, %48 : vector<16x1xf32>
    %50 = math.rsqrt %49 : vector<16x1xf32>
    %51 = arith.mulf %47, %50 : vector<16x1xf32>
    %c0_29 = arith.constant 0 : index
    %c0_30 = arith.constant 0 : index
    %52 = vector.load %arg15[%c0_29, %c0_30] : memref<16x8xf32, #tpu.memory_space<vmem>>, vector<16x6xf32>
    tpu.vector_store %arg15[%c0_29, %c0_30], %12 {strides = array<i32>} : memref<16x8xf32, #tpu.memory_space<vmem>>, vector<16x6xf32>,
    %c0_31 = arith.constant 0 : index
    %c6 = arith.constant 6 : index
    %53 = vector.load %arg15[%c0_31, %c6] : memref<16x8xf32, #tpu.memory_space<vmem>>, vector<16x1xf32>
    tpu.vector_store %arg15[%c0_31, %c6], %51 {strides = array<i32>} : memref<16x8xf32, #tpu.memory_space<vmem>>, vector<16x1xf32>,
    %c0_32 = arith.constant 0 : index
    %c7 = arith.constant 7 : index
    %54 = vector.load %arg15[%c0_32, %c7] : memref<16x8xf32, #tpu.memory_space<vmem>>, vector<16x1xf32>
    tpu.vector_store %arg15[%c0_32, %c7], %46 {strides = array<i32>} : memref<16x8xf32, #tpu.memory_space<vmem>>, vector<16x1xf32>,
    %c0_33 = arith.constant 0 : index
    %c0_34 = arith.constant 0 : index
    %55 = vector.load %arg10[%c0_33, %c0_34] : memref<8x10xf32, #tpu.memory_space<vmem>>, vector<8x10xf32>
    %56 = vector.extract_strided_slice %55 {offsets = [0, 0], sizes = [6, 10], strides = [1, 1]} : vector<8x10xf32> to vector<6x10xf32>
    %cst_35 = arith.constant dense<0.000000e+00> : vector<16x10xf32>
    %57 = tpu.matmul %12, %56, %cst_35 {dimension_numbers = #tpu.dot_dimension_numbers<[1], [0], [0], [1], [0, 0, 1, 1], [], []>} : vector<16x6xf32>, vector<6x10xf32>, vector<16x10xf32> -> vector<16x10xf32>
    %58 = vector.extract_strided_slice %55 {offsets = [6, 0], sizes = [1, 10], strides = [1, 1]} : vector<8x10xf32> to vector<1x10xf32>
    %59 = vector.broadcast %51 : vector<16x1xf32> to vector<16x10xf32>
    %60 = vector.broadcast %58 : vector<1x10xf32> to vector<16x10xf32>
    %61 = arith.mulf %59, %60 : vector<16x10xf32>
    %62 = arith.addf %57, %61 : vector<16x10xf32>
    %63 = vector.extract_strided_slice %55 {offsets = [7, 0], sizes = [1, 10], strides = [1, 1]} : vector<8x10xf32> to vector<1x10xf32>
    %64 = vector.broadcast %46 : vector<16x1xf32> to vector<16x10xf32>
    %65 = vector.broadcast %63 : vector<1x10xf32> to vector<16x10xf32>
    %66 = arith.mulf %64, %65 : vector<16x10xf32>
    %67 = arith.addf %62, %66 : vector<16x10xf32>
    %c0_36 = arith.constant 0 : index
    %c0_37 = arith.constant 0 : index
    %68 = vector.load %arg11[%c0_36, %c0_37] : memref<1x10xf32, #tpu.memory_space<vmem>>, vector<1x10xf32>
    %69 = vector.broadcast %68 : vector<1x10xf32> to vector<16x10xf32>
    %70 = arith.addf %67, %69 : vector<16x10xf32>
    %71 = math.tanh %70 : vector<16x10xf32>
    %c0_38 = arith.constant 0 : index
    %c0_39 = arith.constant 0 : index
    %72 = vector.load %arg12[%c0_38, %c0_39] : memref<10x4xf32, #tpu.memory_space<vmem>>, vector<10x4xf32>
    %cst_40 = arith.constant dense<0.000000e+00> : vector<16x4xf32>
    %73 = tpu.matmul %71, %72, %cst_40 {dimension_numbers = #tpu.dot_dimension_numbers<[1], [0], [0], [1], [0, 0, 1, 1], [], []>} : vector<16x10xf32>, vector<10x4xf32>, vector<16x4xf32> -> vector<16x4xf32>
    %c0_41 = arith.constant 0 : index
    %c0_42 = arith.constant 0 : index
    %74 = vector.load %arg13[%c0_41, %c0_42] : memref<1x4xf32, #tpu.memory_space<vmem>>, vector<1x4xf32>
    %75 = vector.broadcast %74 : vector<1x4xf32> to vector<16x4xf32>
    %76 = arith.addf %73, %75 : vector<16x4xf32>
    %cst_43 = arith.constant dense<0xFF800000> : vector<16xf32>
    %77 = vector.multi_reduction <maximumf>, %76, %cst_43 [1] : vector<16x4xf32> to vector<16xf32>
    %78 = vector.shape_cast %77 : vector<16xf32> to vector<16x1xf32>
    %79 = vector.broadcast %78 : vector<16x1xf32> to vector<16x4xf32>
    %80 = arith.subf %76, %79 : vector<16x4xf32>
    %81 = math.exp %80 : vector<16x4xf32>
    %cst_44 = arith.constant dense<0.000000e+00> : vector<16xf32>
    %82 = vector.multi_reduction <add>, %81, %cst_44 [1] : vector<16x4xf32> to vector<16xf32>
    %83 = vector.shape_cast %82 : vector<16xf32> to vector<16x1xf32>
    %84 = vector.broadcast %83 : vector<16x1xf32> to vector<16x4xf32>
    %85 = arith.divf %81, %84 : vector<16x4xf32>
    %c0_45 = arith.constant 0 : index
    %c0_46 = arith.constant 0 : index
    %86 = vector.load %arg16[%c0_45, %c0_46] : memref<16x4xf32, #tpu.memory_space<vmem>>, vector<16x4xf32>
    tpu.vector_store %arg16[%c0_45, %c0_46], %85 {strides = array<i32>} : memref<16x4xf32, #tpu.memory_space<vmem>>, vector<16x4xf32>,
    return
  }
  func.func @transform_0(%arg0: i32) -> (i32, i32) {
    %c0_i32 = arith.constant 0 : i32
    %c0_i32_0 = arith.constant 0 : i32
    return %arg0, %c0_i32 : i32, i32
  }
  func.func @transform_1(%arg0: i32) -> (i32, i32) {
    %c0_i32 = arith.constant 0 : i32
    %c0_i32_0 = arith.constant 0 : i32
    %c0_i32_1 = arith.constant 0 : i32
    return %c0_i32, %c0_i32_0 : i32, i32
  }
  func.func @transform_2(%arg0: i32) -> (i32, i32) {
    %c0_i32 = arith.constant 0 : i32
    %c0_i32_0 = arith.constant 0 : i32
    %c0_i32_1 = arith.constant 0 : i32
    return %c0_i32, %c0_i32_0 : i32, i32
  }
  func.func @transform_3(%arg0: i32) -> (i32, i32) {
    %c0_i32 = arith.constant 0 : i32
    %c0_i32_0 = arith.constant 0 : i32
    %c0_i32_1 = arith.constant 0 : i32
    return %c0_i32, %c0_i32_0 : i32, i32
  }
  func.func @transform_4(%arg0: i32) -> (i32, i32) {
    %c0_i32 = arith.constant 0 : i32
    %c0_i32_0 = arith.constant 0 : i32
    %c0_i32_1 = arith.constant 0 : i32
    return %c0_i32, %c0_i32_0 : i32, i32
  }
  func.func @transform_5(%arg0: i32) -> (i32, i32) {
    %c0_i32 = arith.constant 0 : i32
    %c0_i32_0 = arith.constant 0 : i32
    %c0_i32_1 = arith.constant 0 : i32
    return %c0_i32, %c0_i32_0 : i32, i32
  }
  func.func @transform_6(%arg0: i32) -> (i32, i32) {
    %c0_i32 = arith.constant 0 : i32
    %c0_i32_0 = arith.constant 0 : i32
    %c0_i32_1 = arith.constant 0 : i32
    return %c0_i32, %c0_i32_0 : i32, i32
  }
  func.func @transform_7(%arg0: i32) -> (i32, i32) {
    %c0_i32 = arith.constant 0 : i32
    %c0_i32_0 = arith.constant 0 : i32
    %c0_i32_1 = arith.constant 0 : i32
    return %c0_i32, %c0_i32_0 : i32, i32
  }
  func.func @transform_8(%arg0: i32) -> (i32, i32) {
    %c0_i32 = arith.constant 0 : i32
    %c0_i32_0 = arith.constant 0 : i32
    %c0_i32_1 = arith.constant 0 : i32
    return %c0_i32, %c0_i32_0 : i32, i32
  }
  func.func @transform_9(%arg0: i32) -> (i32, i32) {
    %c0_i32 = arith.constant 0 : i32
    %c0_i32_0 = arith.constant 0 : i32
    %c0_i32_1 = arith.constant 0 : i32
    return %c0_i32, %c0_i32_0 : i32, i32
  }
  func.func @transform_10(%arg0: i32) -> (i32, i32) {
    %c0_i32 = arith.constant 0 : i32
    %c0_i32_0 = arith.constant 0 : i32
    %c0_i32_1 = arith.constant 0 : i32
    return %c0_i32, %c0_i32_0 : i32, i32
  }
  func.func @transform_11(%arg0: i32) -> (i32, i32) {
    %c0_i32 = arith.constant 0 : i32
    %c0_i32_0 = arith.constant 0 : i32
    %c0_i32_1 = arith.constant 0 : i32
    return %c0_i32, %c0_i32_0 : i32, i32
  }
  func.func @transform_12(%arg0: i32) -> (i32, i32) {
    %c0_i32 = arith.constant 0 : i32
    %c0_i32_0 = arith.constant 0 : i32
    %c0_i32_1 = arith.constant 0 : i32
    return %c0_i32, %c0_i32_0 : i32, i32
  }
  func.func @transform_13(%arg0: i32) -> (i32, i32) {
    %c0_i32 = arith.constant 0 : i32
    %c0_i32_0 = arith.constant 0 : i32
    return %arg0, %c0_i32 : i32, i32
  }
  func.func @transform_14(%arg0: i32) -> (i32, i32) {
    %c0_i32 = arith.constant 0 : i32
    %c0_i32_0 = arith.constant 0 : i32
    return %arg0, %c0_i32 : i32, i32
  }
  func.func @transform_15(%arg0: i32) -> (i32, i32) {
    %c0_i32 = arith.constant 0 : i32
    %c0_i32_0 = arith.constant 0 : i32
    return %arg0, %c0_i32 : i32, i32
  }
}

</mosaic_0001>

<bundles_post_ra>
// kernel: dagmm_forward.1
= control target key start
LH: loop header
LB: loop body
LE: loop exit
PB: predicated region body
PF: predicated region fallthrough
CT: control target
= control target key end

     0   :  { %s2751_s0 = inlined_call_operand.vmem [shape: f32[50,200], index: 0, kind: input, shape index: {}]   ;;  %s2752_s1 = inlined_call_operand.vmem [shape: bf16[200,32], index: 1, kind: input, shape index: {}]   ;;  %s2753_s2 = inlined_call_operand.vmem [shape: f32[1,32], index: 2, kind: input, shape index: {}]   ;;  %s2754_s3 = inlined_call_operand.vmem [shape: f32[32,6], index: 3, kind: input, shape index: {}]   ;;  %s2755_s4 = inlined_call_operand.vmem [shape: f32[1,6], index: 4, kind: input, shape index: {}]   ;;  %s2756_s5 = inlined_call_operand.vmem [shape: f32[6,32], index: 5, kind: input, shape index: {}]   ;;  %s2757_s6 = inlined_call_operand.vmem [shape: f32[1,32], index: 6, kind: input, shape index: {}]   ;;  %s2758_s7 = inlined_call_operand.vmem [shape: bf16[32,200], index: 7, kind: input, shape index: {}]   ;;  %s2759_s8 = inlined_call_operand.vmem [shape: f32[1,200], index: 8, kind: input, shape index: {}]   ;;  %s2760_s9 = inlined_call_operand.vmem [shape: f32[8,10], index: 9, kind: input, shape index: {}]   ;;  %s2761_s10 = inlined_call_operand.vmem [shape: f32[1,10], index: 10, kind: input, shape index: {}]   ;;  %s2762_s11 = inlined_call_operand.vmem [shape: f32[10,4], index: 11, kind: input, shape index: {}]   ;;  %s2763_s12 = inlined_call_operand.vmem [shape: f32[1,4], index: 12, kind: input, shape index: {}]   ;;  %s2764_s13 = inlined_call_operand.hbm [shape: f32[50,200], index: 13, kind: output, shape index: {0}]   ;;  %s2765_s14 = inlined_call_operand.vmem [shape: f32[50,8], index: 14, kind: output, shape index: {1}]   ;;  %s2766_s15 = inlined_call_operand.vmem [shape: f32[50,4], index: 15, kind: output, shape index: {2}]  }
   0x1   :  { %2775 = sst [smem:[#allocation13_spill]] %s2751_s0 }
   0x2   :  { %2776 = sst [smem:[#allocation14_spill]] %s2752_s1 }
   0x3   :  { %2777 = sst [smem:[#allocation15_spill]] %s2753_s2 }
   0x4   :  { %2778 = sst [smem:[#allocation16_spill]] %s2754_s3 }
   0x5   :  { %2779 = sst [smem:[#allocation17_spill]] %s2755_s4 }
   0x6   :  { %2780 = sst [smem:[#allocation18_spill]] %s2765_s14 }
   0x7   :  { %2781 = sst [smem:[#allocation19_spill]] %s2766_s15 }
   0x8   :  { %21 = vsyncpa [#allocation3], 0 }
   0x9   :  { %23 = vsyncpa [#allocation3 + $0x1], 0  ;;  %s2269_s18 = smov 0   ;;  %s2271_s19 = smov 0  }
   0xa   :  { %s2273_s20 = smov 0   ;;  %s2275_s21 = smov 0  }
   0xb LB: > { %2782 = sst [smem:[#allocation7_spill]] %s2108_s18  ;;  %s2290_s22 = sadd.s32 4294967295, %s2120_s21   ;;  %s2120_s21 = sphi %s2275_s21, %s2807_s21   ;;  %s2116_s20 = sphi %s2273_s20, %s2809_s20   ;;  %s2112_s19 = sphi %s2271_s19, %s2811_s19   ;;  %s2108_s18 = sphi %s2269_s18, %s2810_s18  }
   0xc   : > { %2783 = sst [smem:[#allocation8_spill]] %s2116_s20  ;;  %s1617_s23 = sadd.s32 4294967294, %s2120_s21  }
   0xd   : > { %2784 = sst [smem:[#allocation9_spill]] %s2120_s21  ;;  %s2294_s24 = sadd.s32 1, %s2120_s21  }
   0xe   : > { %2785 = sst [smem:[#allocation10_spill]] %s2294_s24  ;;  %s314_s25 = sadd.s32 1, %s2116_s20 }
   0xf   : > { %s311_s26 = ssub.s32 %s2120_s21, %s2294_s24  ;;  %p324_p0 = scmp.ne.s32.totalorder %s2116_s20, %s2112_s19 }
  0x10   : > { %p312_p1 = scmp.eq.s32.totalorder %s311_s26, 0  ;;  %p325_p2 = scmp.eq.s32.totalorder %s2290_s22, 3 }
  0x11   : > { %p330_p3 = scmp.ne.s32.totalorder %s2112_s19, %s2108_s18  ;;  %p331_p4 = scmp.eq.s32.totalorder %s1617_s23, 3 }
  0x12   : > { %s2305_s27 = scalar_select %p312_p1, %s2116_s20, %s314_s25  }
  0x13   : > { %p2307_p5 = por %p325_p2, %p324_p0  ;;  %p2311_p6 = por %p331_p4, %p330_p3 }
  0x14   : > { %2786 = sst [smem:[#allocation11_spill]] %s2305_s27  ;;  %p1620_p7 = scmp.ge.s32.totalorder %s2120_s21, 1 }
  0x15   : > { %s2788_s29 = scalar_select %p2311_p6, 1, 0 }
  0x16   : > { %p457_p8 = scmp.lt.s32.totalorder %s2120_s21, 5 }
  0x17   : > { %2789 = sst [smem:[#allocation12_spill]] %s2788_s29 }
  0x18   : > { %p458_p9 = pnand %p1620_p7, %p457_p8 }
  0x19   : > { %s2790_s1 = sld [smem:[#allocation14_spill]] (!%p458_p9)  ;;  %s2324_s25 = sshll.u32 (!%p458_p9), %s2290_s22, 1 }
  0x1a   : > { %461 = sbr.rel (%p458_p9) target bundleno = 1315 (0x523), region = 72  ;;  %p525_p10 = scmp.lt.s32.totalorder (!%p458_p9), %s2324_s25, 6 }
  0x1b   : > { %s2791_s0 = sld [smem:[#allocation13_spill]] (!%p458_p9) }
  0x1c   : > { %s2792_s3 = sld [smem:[#allocation16_spill]] (!%p458_p9) }
  0x1d   : > { %s2793_s2 = sld [smem:[#allocation15_spill]] (!%p458_p9) }
  0x1e   : > { %s2794_s4 = sld [smem:[#allocation17_spill]] (!%p458_p9) }
  0x1f   : > { %v1754_v0 = vld [vmem:[%s2790_s1 + $0x38] sm:$0xff]  ;;  %v583_v1 = vld [vmem:[%s2790_s1 + $0x60] sm:$0xf]  ;;  %v1753_v3 = vld [vmem:[%s2790_s1 + $0x30] sm:$0xff]  ;;  %vm667_vm0 = vcmask 1043456   ;;  %s526_s20 = scalar_select %p525_p10, %s2324_s25, 6 }
  0x20   : > { %v637_v2 = vunpack.c.l.b16 %v583_v1  ;;  %671 = vmatpush.bf16.msra.mxu0 %v1754_v0  ;;  %v1752_v6 = vld [vmem:[%s2790_s1 + $0x28] sm:$0xff]  ;;  %v1758_v7 = vld [vmem:[%s2790_s1 + $0x58] sm:$0xff]  ;;  %v1751_v8 = vld [vmem:[%s2790_s1 + $0x20] sm:$0xff]  ;;  %vm663_vm1 = vcmask 588800   ;;  %vm709_vm2 = vcmask 261120   ;;  %vm751_vm3 = vcmask 1045504  }
  0x21   : > { %v1757_v9 = vld [vmem:[%s2790_s1 + $0x50] sm:$0xff]  ;;  %s1746_s18 = sshll.u32 %s526_s20, 4  ;;  %v1750_v10 = vld [vmem:[%s2790_s1 + $0x18] sm:$0xff]  ;;  %v1756_v11 = vld [vmem:[%s2790_s1 + $0x48] sm:$0xff]  ;;  %vm744_vm4 = vcmask 48128   ;;  %vm1058_vm5 = vcmask 1041408  }
  0x22   : > { %v650_v4 = vpack.c.b16 %v637_v2, %v637_v2  ;;  %s529_s24 = scalar_lea.vmem %s2791_s0, %s1746_s18  ;;  %v1749_v12 = vld [vmem:[%s2790_s1 + $0x10] sm:$0xff]  ;;  %v1755_v13 = vld [vmem:[%s2790_s1 + $0x40] sm:$0xff]  ;;  %v1748_v17 = vld [vmem:[%s2790_s1 + $0x8] sm:$0xff]  ;;  %s2394_s18 = sand.u32 1, %s2112_s19   ;;  %vm996_vm13 = vcmask 56368   ;;  %vm999_vm15 = vcmask 64568  }
  0x23   : > { %v2358_v14 = vld [vmem:[%s529_s24 + $0x8] sm:$0xff]  ;;  %v2360_v15 = vld [vmem:[%s529_s24 + $0x18] sm:$0xff]  ;;  %v1747_v18 = vld [vmem:[%s2790_s1] sm:$0xff]  ;;  %s1622_s26 = sshll.u32 %s2394_s18, 4  ;;  %s2773_s29 = scalar_lea.sflag [#allocation3], %s2394_s18 }
  0x24   : > { %v669_v5 = vsel %vm667_vm0, %v650_v4, 0  ;;  %672 = vmatpush.bf16.msra.mxu0 %v1753_v3  ;;  %v558_v16 = vpack.c.bf16 %v2360_v15, %v2358_v14  ;;  %v2371_v19 = vld [vmem:[%s529_s24] sm:$0xff]  ;;  %v2373_v20 = vld [vmem:[%s529_s24 + $0x10] sm:$0xff]  ;;  %v704_v22 = vld [vmem:[%s2792_s3 + $0x18] sm:$0xff]  ;;  %s2407_s17 = scalar_lea.vmem [#allocation4], %s1622_s26   ;;  %v847_v62 = vmul.f32 %v2358_v14, %v2358_v14  ;;  %s1621_s24 = sshll.u32 %s2394_s18, 5 }
  0x25   : > { %688 = vmatpush.bf16.msra.mxu1 %v669_v5  ;;  %v557_v21 = vpack.c.bf16 %v2373_v20, %v2371_v19  ;;  %728 = vmatpush.msra.mxu2 %v704_v22  ;;  %v703_v23 = vld [vmem:[%s2792_s3 + $0x10] sm:$0xff]  ;;  %v702_v24 = vld [vmem:[%s2792_s3 + $0x8] sm:$0xff]  ;;  %v701_v25 = vld [vmem:[%s2792_s3] sm:$0xff]  ;;  %v846_v61 = vmul.f32 %v2371_v19, %v2371_v19  ;;  %s2462_s20 = scalar_lea.vmem [#allocation2], %s1621_s24  ;;  %s2621_s24 = scalar_lea.vmem [#allocation5], %s1622_s26  }
  0x26   : > { %v1942_v26 = vld [vmem:[%s2793_s2] ss:$0 sm:$0xff]  ;;  %v1761_v43 = vld [vmem:[%s2758_s7 + $0x14] sm:$0xf]  ;;  %v1693_v44 = vld [vmem:[%s2758_s7 + $0x18] sm:$0xf0] }
  0x27   : > { %729 = vmatpush.msra.mxu2 %v703_v23  ;;  %v739_v37 = vld [vmem:[%s2756_s5] sm:$0x3f]  ;;  %v1691_v45 = vld [vmem:[%s2758_s7 + $0x10] sm:$0xf]  ;;  %v1696_v46 = vor.u32 %v1761_v43, %v1693_v44  ;;  %v1762_v47 = vld [vmem:[%s2758_s7 + $0x14] sm:$0xf0] }
  0x28   : > { %673 = vmatpush.bf16.msra.mxu0 %v1752_v6  ;;  %1678 = vmatpush.msk.msra.mxu3 %vm751_vm3, %v739_v37  ;;  %v1943_v38 = vld [vmem:[%s2794_s4] ss:$0 sm:$0xff]  ;;  %v1692_v48 = vor.u32 %v1762_v47, %v1691_v45  ;;  %v1759_v49 = vld [vmem:[%s2758_s7 + $0x4] sm:$0xf]  ;;  %v1685_v50 = vld [vmem:[%s2758_s7 + $0x8] sm:$0xf0] }
  0x29   : > { %689 = vmatpush.bf16.msra.mxu1 %v1758_v7  ;;  %730 = vmatpush.msra.mxu2 %v702_v24  ;;  %v1683_v51 = vld [vmem:[%s2758_s7] sm:$0xf]  ;;  %v1688_v52 = vor.u32 %v1759_v49, %v1685_v50  ;;  %v1760_v53 = vld [vmem:[%s2758_s7 + $0x4] sm:$0xf0]  ;;  %v850_v63 = vsel %vm663_vm1, %v847_v62, 0.0  ;;  %s1153_s26 = ssub.s32 (%p2307_p5), 7, %s2324_s25 }
  0x2a   : > { %820 = vmatpush.bf16.msrb.mxu3 %v1692_v48  ;;  %v1684_v54 = vor.u32 %v1760_v53, %v1683_v51  ;;  %v2442_v55 = vld [vmem:[%s2760_s9] sm:$0xff]  ;;  %v851_v0 = vadd.f32 %v850_v63, %v846_v61  ;;  %p1154_p11 = scmp.lt.s32.totalorder (%p2307_p5), %s1153_s26, 2 }
  0x2b   : > { %731 = vmatpush.msra.mxu2 %v701_v25  ;;  %v1944_v57 = vld [vmem:[%s2757_s6] ss:$0 sm:$0xff] }
  0x2c   : > { %674 = vmatpush.bf16.msra.mxu0 %v1751_v8  ;;  %852 = vadd.xlane.f32.xlu2 %v851_v0  ;;  %v785_v4 = vld [vmem:[%s2759_s8] sm:$0x3] }
  0x2d   : > { %690 = vmatpush.bf16.msra.mxu1 %v1757_v9  ;;  %834 = vmatpush.bf16.msrb.mxu2 %v1696_v46  ;;  %v787_v5 = vperm.slane %v785_v4, 0  ;;  %v788_v6 = vperm.slane %v785_v4, 1 }
  0x2e   : > { %821 = vmatpush.bf16.msrb.mxu3 %v1684_v54 }
  0x30   : > { %675 = vmatpush.bf16.msra.mxu0 %v1750_v10 }
  0x31   : > { %691 = vmatpush.bf16.msra.mxu1 %v1756_v11  ;;  %835 = vmatpush.bf16.msrb.mxu2 %v1688_v52 }
  0x34   : > { %676 = vmatpush.bf16.msra.mxu0 %v1749_v12 }
  0x35   : > { %692 = vmatpush.bf16.msra.mxu1 %v1755_v13 }
  0x38   : > { %1675 = vmatmul.msk.bf16.vlgmr.msra.gmra.mxu1 %vm663_vm1, %v558_v16  ;;  %677 = vmatpush.bf16.msra.mxu0 %v1748_v17 }
  0x3c   : > { %678 = vmatpush.bf16.msra.mxu0 %v1747_v18 }
  0x3f   : > { %679 = vmatmul.bf16.vlgmr.msra.gmra.mxu0 %v557_v21 }
  0x9f   : > { %v853_v51 = vpop.xlane.xlu2 %852 }
  0xa0   : > { %v970_v52 = vmax.f32 %v853_v51, 1e-20  ;;  %v898_v53 = vmax.f32 %v853_v51, 1e-16 }
  0xa2   : > { %vm978_vm6 = vweird.f32 %v970_v52  ;;  %vm906_vm8 = vweird.f32 %v898_v53 }
  0xb5   : > { %v694_v27 = vpop.f32.mrf.mxu1 }
  0xbc   : > { %v680_v28 = vpop.f32.mrf.mxu0 }
  0xbd   : > { %v681_v29 = vadd.f32 %v1942_v26, %v680_v28  ;;  %v696_v33 = vpop.f32.mrf.mxu1 }
  0xbf   : > { %v695_v30 = vadd.f32 %v694_v27, %v681_v29 }
  0xc1   : > { %1947 = vtanh.f32 %v695_v30 }
  0xc4   : > { %v682_v31 = vpop.f32.mrf.mxu0 }
  0xc5   : > { %v683_v32 = vadd.f32 %v1942_v26, %v682_v31 }
  0xc7   : > { %v1948_v34 = vpop.eup %1947  ;;  %v697_v35 = vadd.f32 %v696_v33, %v683_v32 }
  0xc8   : > { %1676 = vmatmul.msk.f32.vlgmr.msra.gmra.mxu2 %vm709_vm2, %v1948_v34 }
  0xc9   : > { %1949 = vtanh.f32 %v697_v35  ;;  %v849_v35 = vmul.f32 %v2360_v15, %v2360_v15 }
  0xcf   : > { %v1950_v36 = vpop.eup %1949 }
  0xd0   : > { %1677 = vmatmul.msk.f32.gmra.mxu2 %vm709_vm2, %v1950_v36 }
 0x14b   : > { %v733_v39 = vpop.f32.mrf.mxu2 }
 0x14c   : > { %v734_v40 = vadd.f32 %v1943_v38, %v733_v39 }
 0x14e   : > { %994 = vst.msk [vmem:[%s2407_s17] sm:$0xff] %vm744_vm4, %v734_v40  ;;  %1679 = vmatmul.msk.f32.vlgmr.msra.gmra.mxu3 %vm744_vm4, %v734_v40 }
 0x14f   : > { %1699 = vmatpush.msk.msra.mxu3 %vm751_vm3, %v2442_v55 }
 0x153   : > { %v736_v41 = vpop.f32.mrf.mxu2 }
 0x154   : > { %v737_v42 = vadd.f32 %v1943_v38, %v736_v41  ;;  %v848_v38 = vmul.f32 %v2373_v20, %v2373_v20 }
 0x156   : > { %995 = vst.msk [vmem:[%s2407_s17 + $0x8] sm:$0xff] %vm744_vm4, %v737_v42  ;;  %1680 = vmatmul.msk.f32.gmra.mxu3 %vm744_vm4, %v737_v42 }
 0x1d1   : > { %v772_v56 = vpop.f32.mrf.mxu3 }
 0x1d2   : > { %v773_v58 = vadd.f32 %v1944_v57, %v772_v56 }
 0x1d4   : > { %1951 = vtanh.f32 %v773_v58 }
 0x1d9   : > { %v775_v59 = vpop.f32.mrf.mxu3 }
 0x1da   : > { %v776_v60 = vadd.f32 %v1944_v57, %v775_v59  ;;  %v1952_v1 = vpop.eup %1951 }
 0x1dc   : > { %1953 = vtanh.f32 %v776_v60 }
 0x1dd   : > { %1955 = vrsqrt.f32 %v970_v52 }
 0x1de   : > { %1957 = vrsqrt.f32 %v898_v53 }
 0x1e2   : > { %v1954_v2 = vpop.eup %1953 }
 0x1e3   : > { %v780_v3 = vpack.c.bf16 %v1954_v2, %v1952_v1 }
 0x1e5   : > { %1697 = vmatmul.msk.bf16.vlgmr.msrb.gmra.mxu3 %vm709_vm2, %v780_v3  ;;  %1698 = vmatmul.msk.bf16.vlgmr.msrb.gmra.mxu2 %vm709_vm2, %v780_v3 }
 0x1f5   : > { %1700 = vmatmul.msk.f32.vlgmr.msra.gmra.mxu3 %vm744_vm4, %v734_v40  ;;  %v854_v40 = vsel %vm663_vm1, %v849_v35, 0.0  ;;  %v1032_v35 = vperm.slane %v2442_v55, 7 }
 0x1fd   : > { %1701 = vmatmul.msk.f32.gmra.mxu3 %vm744_vm4, %v737_v42  ;;  %v855_v42 = vadd.f32 %v854_v40, %v848_v38 }
 0x268   : > { %v823_v7 = vpop.f32.mrf.mxu3  ;;  %v837_v8 = vpop.f32.mrf.mxu2 }
 0x269   : > { %v824_v9 = vadd.f32 %v823_v7, %v787_v5  ;;  %v838_v10 = vadd.f32 %v837_v8, %v788_v6  ;;  %v1046_v7 = vld [vmem:[%s2762_s11 + $0x8] sm:$0x3]  ;;  %v1045_v8 = vld [vmem:[%s2762_s11] sm:$0xff] }
 0x26a   : > { %1772 = vmatpush.msk.msra.mxu2 %vm1058_vm5, %v1046_v7  ;;  %1702 = vmatpush.msk.msrb.mxu1 %vm1058_vm5, %v1046_v7 }
 0x26b   : > { %842 = vst [vmem:[%s2462_s20] sm:$0xff] %v824_v9  ;;  %v858_v11 = vmul.f32 %v824_v9, %v824_v9  ;;  %v859_v12 = vmul.f32 %v838_v10, %v838_v10  ;;  %v883_v23 = vsub.f32 %v2358_v14, %v838_v10  ;;  %v882_v32 = vsub.f32 %v2371_v19, %v824_v9 }
 0x26c   : > { %843 = vst.msk [vmem:[%s2462_s20 + $0x8] sm:$0xff] %vm663_vm1, %v838_v10  ;;  %v871_v43 = vmul.f32 %v838_v10, %v2358_v14  ;;  %v870_v45 = vmul.f32 %v824_v9, %v2371_v19  ;;  %1773 = vmatpush.msra.mxu2 %v1045_v8  ;;  %1077 = vmatpush.msrb.mxu1 %v1045_v8 }
 0x26d   : > { %v862_v13 = vsel %vm663_vm1, %v859_v12, 0.0  ;;  %v887_v34 = vmul.f32 %v883_v23, %v883_v23  ;;  %v886_v37 = vmul.f32 %v882_v32, %v882_v32  ;;  %v1003_v32 = vperm.slane %v2442_v55, 6 }
 0x26e   : > { %v863_v16 = vadd.f32 %v862_v13, %v858_v11  ;;  %v874_v46 = vsel %vm663_vm1, %v871_v43, 0.0 }
 0x26f   : > { %v890_v39 = vsel %vm663_vm1, %v887_v34, 0.0  ;;  %v875_v49 = vadd.f32 %v874_v46, %v870_v45 }
 0x270   : > { %v825_v17 = vpop.f32.mrf.mxu3  ;;  %v839_v18 = vpop.f32.mrf.mxu2  ;;  %864 = vadd.xlane.f32.xlu2 %v863_v16  ;;  %v891_v41 = vadd.f32 %v890_v39, %v886_v37 }
 0x271   : > { %v826_v21 = vadd.f32 %v825_v17, %v787_v5  ;;  %v840_v22 = vadd.f32 %v839_v18, %v788_v6 }
 0x273   : > { %844 = vst [vmem:[%s2462_s20 + $0x10] sm:$0xff] %v826_v21  ;;  %v860_v24 = vmul.f32 %v826_v21, %v826_v21  ;;  %v861_v25 = vmul.f32 %v840_v22, %v840_v22  ;;  %v884_v26 = vsub.f32 %v2373_v20, %v826_v21  ;;  %v885_v27 = vsub.f32 %v2360_v15, %v840_v22 }
 0x274   : > { %845 = vst.msk [vmem:[%s2462_s20 + $0x18] sm:$0xff] %vm663_vm1, %v840_v22  ;;  %v873_v44 = vmul.f32 %v840_v22, %v2360_v15  ;;  %v872_v47 = vmul.f32 %v826_v21, %v2373_v20  ;;  %v2489_v15 = vpop.eup %1955 }
 0x275   : > { %v866_v28 = vsel %vm663_vm1, %v861_v25, 0.0  ;;  %v888_v29 = vmul.f32 %v884_v26, %v884_v26  ;;  %v889_v30 = vmul.f32 %v885_v27, %v885_v27  ;;  %v2491_v54 = vpop.eup %1957  ;;  %v973_v20 = vmul.f32 %v2489_v15, %v970_v52 }
 0x276   : > { %v867_v31 = vadd.f32 %v866_v28, %v860_v24  ;;  %v878_v48 = vsel %vm663_vm1, %v873_v44, 0.0  ;;  %v901_v56 = vmul.f32 %v2491_v54, %v898_v53  ;;  %vm979_vm7 = vweird.f32 %v2489_v15 }
 0x277   : > { %v894_v33 = vsel %vm663_vm1, %v889_v30, 0.0  ;;  %v879_v50 = vadd.f32 %v878_v48, %v872_v47  ;;  %v974_v59 = vmul.f32 %v2489_v15, %v973_v20  ;;  %vm907_vm9 = vweird.f32 %v2491_v54  ;;  %vm2536_vm10 = vmor %vm978_vm6, %vm979_vm7 }
 0x278   : > { %868 = vadd.xlane.f32.xlu1 %v867_v31  ;;  %v895_v36 = vadd.f32 %v894_v33, %v888_v29  ;;  %v902_v61 = vmul.f32 %v2491_v54, %v901_v56  ;;  %vm2544_vm11 = vmor %vm906_vm8, %vm907_vm9  ;;  %v1026_v52 = vpop.f32.mrf.mxu3 }
 0x279   : > { %v975_v63 = vmul.f32 0.5, %v974_v59 }
 0x27a   : > { %896 = vadd.xlane.f32.xlu0 %v895_v36  ;;  %v903_v0 = vmul.f32 0.5, %v902_v61 }
 0x27b   : > { %v976_v5 = vsub.f32 1.5, %v975_v63 }
 0x27c   : > { %v904_v12 = vsub.f32 1.5, %v903_v0 }
 0x27d   : > { %v2534_v21 = vmul.f32 %v2489_v15, %v976_v5 }
 0x27e   : > { %v905_v24 = vmul.f32 %v2491_v54, %v904_v12 }
 0x27f   : > { %v981_v33 = vsel %vm2536_vm10, %v2489_v15, %v2534_v21 }
 0x280   : > { %892 = vadd.xlane.f32.xlu1 %v891_v41  ;;  %v909_v34 = vsel %vm2544_vm11, %v2491_v54, %v905_v24 }
 0x282   : > { %856 = vadd.xlane.f32.xlu0 %v855_v42 }
 0x288   : > { %876 = vadd.xlane.f32.xlu1 %v875_v49 }
 0x28a   : > { %880 = vadd.xlane.f32.xlu0 %v879_v50 }
 0x2e3   : > { %v865_v14 = vpop.xlane.xlu2 %864 }
 0x2e4   : > { %v2493_v19 = vmax.f32 %v865_v14, 1e-16 }
 0x2e6   : > { %1959 = vrsqrt.f32 %v2493_v19  ;;  %vm930_vm12 = vweird.f32 %v2493_v19 }
 0x2eb   : > { %v869_v57 = vpop.xlane.xlu1 %868 }
 0x2ec   : > { %v2498_v58 = vmax.f32 %v869_v57, 1e-16  ;;  %v2506_v62 = vpop.eup %1959 }
 0x2ed   : > { %v2501_v60 = vpop.xlane.xlu0 %896  ;;  %v925_v3 = vmul.f32 %v2506_v62, %v2493_v19  ;;  %vm931_vm0 = vweird.f32 %v2506_v62 }
 0x2ee   : > { %1961 = vrsqrt.f32 %v2498_v58  ;;  %vm940_vm14 = vweird.f32 %v2498_v58  ;;  %vm965_vm1 = vcmp.eq.f32.partialorder %v2501_v60, inf  ;;  %v968_v45 = vand.u32 2147483648, %v2501_v60  ;;  %vm932_vm8 = vmor %vm930_vm12, %vm931_vm0 }
 0x2ef   : > { %1963 = vrsqrt.f32 %v2501_v60  ;;  %v926_v16 = vmul.f32 %v2506_v62, %v925_v3  ;;  %vm967_vm11 = vcmp.eq.f32.partialorder %v2501_v60, 0.0 }
 0x2f1   : > { %v927_v28 = vmul.f32 0.5, %v926_v16  ;;  %v1945_v16 = vld [vmem:[%s2761_s10] ss:$0 sm:$0xff] }
 0x2f3   : > { %v2508_v1 = vpop.xlane.xlu1 %892  ;;  %v928_v41 = vsub.f32 1.5, %v927_v28  ;;  %v1946_v28 = vld [vmem:[%s2763_s12] ss:$0 sm:$0xff] }
 0x2f4   : > { %v2510_v2 = vpop.eup %1961  ;;  %1965 = vrsqrt.f32 %v2508_v1  ;;  %vm953_vm2 = vcmp.eq.f32.partialorder %v2508_v1, inf  ;;  %vm955_vm3 = vcmp.eq.f32.partialorder %v2508_v1, 0.0  ;;  %v956_v53 = vand.u32 2147483648, %v2508_v1 }
 0x2f5   : > { %v1964_v4 = vpop.eup %1963  ;;  %v857_v6 = vpop.xlane.xlu0 %856  ;;  %v935_v13 = vmul.f32 %v2510_v2, %v2498_v58  ;;  %v929_v15 = vmul.f32 %v2506_v62, %v928_v41  ;;  %vm941_vm7 = vweird.f32 %v2510_v2 }
 0x2f6   : > { %v959_v9 = vmul.f32 %v1964_v4, %v2501_v60  ;;  %v2522_v10 = vmax.f32 %v857_v6, 1e-16  ;;  %v2524_v11 = vmax.f32 %v857_v6, 1e-20  ;;  %vm942_vm12 = vmor %vm940_vm14, %vm941_vm7  ;;  %vm1051_vm14 = vcmask 80896  }
 0x2f7   : > { %v936_v25 = vmul.f32 %v2510_v2, %v935_v13  ;;  %v933_v5 = vsel %vm932_vm8, %v2506_v62, %v929_v15 }
 0x2f8   : > { %v960_v17 = vmul.f32 %v1964_v4, %v959_v9  ;;  %1967 = vrsqrt.f32 %v2522_v10  ;;  %vm916_vm6 = vweird.f32 %v2522_v10  ;;  %vm988_vm9 = vweird.f32 %v2524_v11 }
 0x2f9   : > { %1969 = vrsqrt.f32 %v2524_v11  ;;  %v937_v37 = vmul.f32 0.5, %v936_v25 }
 0x2fa   : > { %v1966_v18 = vpop.eup %1965  ;;  %v961_v23 = vmul.f32 0.5, %v960_v17 }
 0x2fb   : > { %v947_v26 = vmul.f32 %v1966_v18, %v2508_v1  ;;  %v877_v47 = vpop.xlane.xlu1 %876  ;;  %v938_v48 = vsub.f32 1.5, %v937_v37 }
 0x2fc   : > { %v962_v29 = vsub.f32 1.5, %v961_v23  ;;  %v920_v20 = vmul.f32 %v909_v34, %v877_v47 }
 0x2fd   : > { %v948_v30 = vmul.f32 %v1966_v18, %v947_v26  ;;  %v939_v0 = vmul.f32 %v2510_v2, %v938_v48  ;;  %v881_v8 = vpop.xlane.xlu0 %880 }
 0x2fe   : > { %v1968_v31 = vpop.eup %1967  ;;  %v963_v38 = vmul.f32 %v1964_v4, %v962_v29  ;;  %v944_v19 = vmul.f32 %v933_v5, %v920_v20 }
 0x2ff   : > { %v1970_v36 = vpop.eup %1969  ;;  %v949_v39 = vmul.f32 0.5, %v948_v30  ;;  %v911_v40 = vmul.f32 %v1968_v31, %v2522_v10  ;;  %vm917_vm4 = vweird.f32 %v1968_v31 }
 0x300   : > { %v983_v42 = vmul.f32 %v1970_v36, %v2524_v11  ;;  %v964_v49 = vmul.f32 %v963_v38, %v2501_v60  ;;  %vm989_vm5 = vweird.f32 %v1970_v36  ;;  %vm918_vm10 = vmor %vm916_vm6, %vm917_vm4  ;;  %v1033_v58 = vmul.f32 %v1032_v35, %v944_v19 }
 0x301   : > { %v950_v43 = vsub.f32 1.5, %v949_v39  ;;  %v912_v44 = vmul.f32 %v1968_v31, %v911_v40 }
 0x302   : > { %v984_v46 = vmul.f32 %v1970_v36, %v983_v42  ;;  %v966_v61 = vsel %vm965_vm1, %v2501_v60, %v964_v49  ;;  %vm990_vm1 = vmor %vm988_vm9, %vm989_vm5  ;;  %v943_v60 = vsel %vm942_vm12, %v2510_v2, %v939_v0 }
 0x303   : > { %v951_v50 = vmul.f32 %v1966_v18, %v950_v43  ;;  %v913_v51 = vmul.f32 0.5, %v912_v44  ;;  %v969_v9 = vsel %vm967_vm11, %v968_v45, %v966_v61  ;;  %v1029_v18 = vpop.f32.mrf.mxu3 }
 0x304   : > { %v985_v14 = vmul.f32 0.5, %v984_v46 }
 0x305   : > { %v952_v54 = vmul.f32 %v951_v50, %v2508_v1  ;;  %v914_v56 = vsub.f32 1.5, %v913_v51 }
 0x306   : > { %v986_v57 = vsub.f32 1.5, %v985_v14 }
 0x307   : > { %v954_v59 = vsel %vm953_vm2, %v2508_v1, %v952_v54  ;;  %v915_v63 = vmul.f32 %v1968_v31, %v914_v56 }
 0x308   : > { %v987_v3 = vmul.f32 %v1970_v36, %v986_v57  ;;  %v957_v4 = vsel %vm955_vm3, %v956_v53, %v954_v59 }
 0x309   : > { %v992_v6 = vmul.f32 %v981_v33, %v957_v4  ;;  %v919_v7 = vsel %vm918_vm10, %v1968_v31, %v915_v63 }
 0x30a   : > { %v991_v10 = vsel %vm990_vm1, %v1970_v36, %v987_v3  ;;  %v921_v11 = vmul.f32 %v919_v7, %v881_v8 }
 0x30b   : > { %v993_v62 = vmul.f32 %v991_v10, %v969_v9  ;;  %v1004_v1 = vmul.f32 %v1003_v32, %v992_v6  ;;  %997 = vst.msk [vmem:[%s2407_s17] sm:$0xff] %vm996_vm13, %v992_v6 }
 0x30c   : > { %1000 = vst.msk [vmem:[%s2407_s17] sm:$0xff] %vm999_vm15, %v944_v19  ;;  %v945_v12 = vmul.f32 %v943_v60, %v921_v11 }
 0x30d   : > { %v1027_v13 = vadd.f32 %v1026_v52, %v1004_v1  ;;  %998 = vst.msk [vmem:[%s2407_s17 + $0x8] sm:$0xff] %vm996_vm13, %v993_v62  ;;  %v1005_v17 = vmul.f32 %v1003_v32, %v993_v62  ;;  %vm1085_vm13 = vcmask 31744  }
 0x30e   : > { %1001 = vst.msk [vmem:[%s2407_s17 + $0x8] sm:$0xff] %vm999_vm15, %v945_v12  ;;  %v1034_v2 = vmul.f32 %v1032_v35, %v945_v12 }
 0x30f   : > { %v1035_v21 = vadd.f32 %v1033_v58, %v1027_v13  ;;  %v1030_v22 = vadd.f32 %v1029_v18, %v1005_v17 }
 0x311   : > { %v1041_v23 = vadd.f32 %v1945_v16, %v1035_v21  ;;  %v1036_v24 = vadd.f32 %v1034_v2, %v1030_v22 }
 0x313   : > { %1971 = vtanh.f32 %v1041_v23  ;;  %v1042_v25 = vadd.f32 %v1945_v16, %v1036_v24 }
 0x315   : > { %1973 = vtanh.f32 %v1042_v25 }
 0x319   : > { %v1972_v26 = vpop.eup %1971 }
 0x31a   : > { %1703 = vmatmul.msk.f32.vlgmr.msrb.gmra.mxu1 %vm1051_vm14, %v1972_v26 }
 0x31b   : > { %v1974_v27 = vpop.eup %1973 }
 0x31c   : > { %1704 = vmatmul.msk.f32.vlgmr.msra.gmra.mxu2 %vm1051_vm14, %v1974_v27 }
 0x397   : > { %v1079_v29 = vpop.f32.mrf.mxu1 }
 0x398   : > { %v1080_v55 = vadd.f32 %v1946_v28, %v1079_v29 }
 0x39a   : > { %v1086_v30 = vsel %vm1085_vm13, %v1080_v55, -inf }
 0x39b   : > { %1087 = vmax.xlane.f32.xlu2 %v1086_v30 }
 0x39f   : > { %v1082_v31 = vpop.f32.mrf.mxu2 }
 0x3a0   : > { %v1083_v32 = vadd.f32 %v1946_v28, %v1082_v31 }
 0x3a2   : > { %v1089_v33 = vsel %vm1085_vm13, %v1083_v32, -inf }
 0x3a3   : > { %1090 = vmax.xlane.f32.xlu0 %v1089_v33 }
 0x40e   : > { %v1088_v34 = vpop.xlane.xlu2 %1087 }
 0x40f   : > { %v1092_v35 = vsub.f32 %v1080_v55, %v1088_v34 }
 0x411   : > { %v1094_v36 = vmul.f32 1.442695, %v1092_v35 }
 0x413   : > { %1975 = vpow2.f32 %v1094_v36 }
 0x416   : > { %v1091_v37 = vpop.xlane.xlu0 %1090 }
 0x417   : > { %v1093_v38 = vsub.f32 %v1083_v32, %v1091_v37 }
 0x419   : > { %v1976_v39 = vpop.eup %1975  ;;  %v1096_v40 = vmul.f32 1.442695, %v1093_v38 }
 0x41a   : > { %v1098_v41 = vsel %vm1085_vm13, %v1976_v39, 0.0 }
 0x41b   : > { %1977 = vpow2.f32 %v1096_v40  ;;  %1099 = vadd.xlane.f32.xlu1 %v1098_v41 }
 0x421   : > { %v1978_v42 = vpop.eup %1977 }
 0x422   : > { %v1101_v43 = vsel %vm1085_vm13, %v1978_v42, 0.0 }
 0x423   : > { %1102 = vadd.xlane.f32.xlu2 %v1101_v43 }
 0x48e   : > { %v1100_v44 = vpop.xlane.xlu1 %1099 }
 0x48f   : > { %1979 = vrcp.f32 %v1100_v44  ;;  %v1115_v49 = vand.u32 2147483648, %v1100_v44  ;;  %v1113_v51 = vand.u32 2147483647, %v1100_v44  ;;  %vm1109_vm0 = vweird.f32 %v1100_v44 }
 0x491   : > { %v1116_v14 = vor.u32 1.1754944e-38, %v1115_v49  ;;  %vm1114_vm3 = vcmp.eq.f32.partialorder %v1113_v51, 8.507059e+37 }
 0x495   : > { %v1980_v45 = vpop.eup %1979 }
 0x496   : > { %v1105_v46 = vmul.f32 %v1980_v45, %v1100_v44  ;;  %v1103_v47 = vpop.xlane.xlu2 %1102  ;;  %vm1110_vm15 = vweird.f32 %v1980_v45 }
 0x497   : > { %1981 = vrcp.f32 %v1103_v47  ;;  %vm1111_vm2 = vmor %vm1109_vm0, %vm1110_vm15  ;;  %v1130_v59 = vand.u32 2147483648, %v1103_v47  ;;  %v1128_v63 = vand.u32 2147483647, %v1103_v47  ;;  %vm1124_vm5 = vweird.f32 %v1103_v47 }
 0x498   : > { %v1106_v48 = vsub.f32 1.0, %v1105_v46 }
 0x499   : > { %v1131_v3 = vor.u32 1.1754944e-38, %v1130_v59  ;;  %vm1129_vm7 = vcmp.eq.f32.partialorder %v1128_v63, 8.507059e+37 }
 0x49a   : > { %v1107_v50 = vmul.f32 %v1980_v45, %v1106_v48 }
 0x49c   : > { %v1108_v52 = vadd.f32 %v1980_v45, %v1107_v50 }
 0x49d   : > { %v1982_v53 = vpop.eup %1981 }
 0x49e   : > { %v1112_v15 = vsel %vm1111_vm2, %v1980_v45, %v1108_v52  ;;  %v1120_v54 = vmul.f32 %v1982_v53, %v1103_v47  ;;  %vm1125_vm4 = vweird.f32 %v1982_v53 }
 0x49f   : > { %v1117_v20 = vsel %vm1114_vm3, %v1116_v14, %v1112_v15  ;;  %vm1126_vm6 = vmor %vm1124_vm5, %vm1125_vm4 }
 0x4a0   : > { %v1118_v56 = vmul.f32 %v1976_v39, %v1117_v20  ;;  %v1121_v57 = vsub.f32 1.0, %v1120_v54 }
 0x4a2   : > { %1134 = vst.msk [vmem:[%s2621_s24] sm:$0xff] %vm1085_vm13, %v1118_v56  ;;  %v1122_v61 = vmul.f32 %v1982_v53, %v1121_v57 }
 0x4a4   : > { %v1123_v0 = vadd.f32 %v1982_v53, %v1122_v61 }
 0x4a6   : > { %v1127_v4 = vsel %vm1126_vm6, %v1982_v53, %v1123_v0  ;;  %1151 = sbr.rel (!%p2307_p5) target bundleno = 1227 (0x4cb), region = 76 }
 0x4a7   : > { %v1132_v5 = vsel %vm1129_vm7, %v1131_v3, %v1127_v4 }
 0x4a8   : > { %v1133_v6 = vmul.f32 %v1978_v42, %v1132_v5 }
 0x4aa   : > { %1135 = vst.msk [vmem:[%s2621_s24 + $0x8] sm:$0xff] %vm1085_vm13, %v1133_v6 }
 0x4ab   : > { %s2813_s26 = smov (!%p1154_p11, %s1153_s26), 2 }
 0x4ac   : > { %s1763_s15 = sshll.u32 %s2813_s26, 4 }
 0x4ad   : > { %s1158_s14 = ssub.s32 32, %s1763_s15 }
 0x4ae   : > { %s1159_s21 = sshll.u32 %s1158_s14, 4 }
 0x4af   : > { %1160 = vsyncadd %s2773_s29, %s1159_s21  ;;  %p2636_p12 = scmp.ne.s32.totalorder %s1763_s15, 0  ;;  %s1765_s16 = sshll.u32 %s2290_s22, 5 }
 0x4b0   : > { %s1164_s0 = scalar_lea.hbm %s2764_s13, %s1765_s16  ;;  %s1166_s1 = sshll.u32 %s2462_s20, 4  ;;  %s2645_s1 = int_to_ptr.vmem [resolvable:$true] %s1166_s1 }
 0x4b1   : > { %s1168_s14 = sshll.u32 %s1164_s0, 4  ;;  %s2774_s21 = sshll.u32 %s2813_s26, 8  ;;  %s2647_s14 = int_to_ptr.hbm [resolvable:$true] %s1168_s14 }
 0x4b2   : > { %s1983_s29 = sshra.s32 %s2645_s1, 4  ;;  %s1985_s15 = sshrl.u32 %s2774_s21, 4  ;;  %s1984_s29 = int_to_ptr.vmem [resolvable:$true] %s1983_s29 }
 0x4b3   : > { %s1990_s2 = scalar_lea.vmem %s1984_s29, %s1985_s15  ;;  %s2186_s3 = smov [#allocation2]  }
 0x4b4   : > { %p1991_p13 = scmp.ne.s32.totalorder %s1984_s29, %s1990_s2  ;;  %s1994_s23 = scalar_lea.vmem %s2186_s3, 64 }
 0x4b5   : > { %p1996_p2 = scmp.lt.s32.totalorder %s1994_s23, %s1990_s2 }
 0x4b6   : > { %p1992_p0 = pnand %p1991_p13, %p2636_p12 }
 0x4b8   : > { %p1993_p1 = pneg %p1992_p0 }
 0x4ba   : > { %p1998_p3 = pnand %p1996_p2, %p1993_p1 }
 0x4bc   : > { %2001 = shalt.err (!%p1998_p3)
}
 0x4bd   : > { %s2002_s0 = sshra.s32 %s2647_s14, 4  ;;  %s2013_s29 = scalar_lea.hbm %s2764_s13, 112  ;;  %s2003_s0 = int_to_ptr.hbm [resolvable:$true] %s2002_s0 }
 0x4be   : > { %s2009_s20 = scalar_lea.hbm %s2003_s0, %s1985_s15  ;;  %p2014_p9 = scmp.lt.s32.totalorder %s2003_s0, %s2764_s13 }
 0x4bf   : > { %p2010_p4 = scmp.ne.s32.totalorder %s2003_s0, %s2009_s20  ;;  %p2015_p10 = scmp.lt.s32.totalorder %s2013_s29, %s2009_s20 }
 0x4c1   : > { %p2011_p7 = pnand %p2010_p4, %p2636_p12  ;;  %p2016_p11 = por %p2015_p10, %p2014_p9 }
 0x4c3   : > { %p2012_p8 = pneg %p2011_p7 }
 0x4c5   : > { %p2017_p13 = pnand %p2016_p11, %p2012_p8 }
 0x4c7   : > { %2020 = shalt.err (!%p2017_p13)
}
 0x4c8   : > { %s2187_s2 = smov 256   ;;  %s2188_s3 = smov 16  }
 0x4c9   : > { %s2800_s15 = scalar_lea.sflag [#allocation3], %s2394_s18  ;;  %s2801_s23 = sshll.u32 %s2813_s26, 8 }
 0x4ca   : > { %1174 = dma.vmem_to_hbm [thread:$0]  (%p2636_p12), %s2645_s1, %s2801_s23, %s2647_s14, %s2800_s15, %s2187_s2, %s2187_s2, %s2188_s3  }
 0x4cb PF: > { %1177 = sbr.rel (!%p2307_p5) target bundleno = 1271 (0x4f7), region = 80  ;;  %s1179_s4 = ssub.s32 (%p2307_p5), 7, %s2324_s25 }
 0x4cc   : > { %s1766_s21 = sshll.u32 (%p2307_p5), %s2290_s22, 4  ;;  %p1180_p0 = scmp.lt.s32.totalorder (%p2307_p5), %s1179_s4, 2 }
 0x4cd   : > { %s2802_s16 = sld [smem:[#allocation18_spill]] (%p2307_p5) }
 0x4d0   : > { %s2815_s4 = smov (!%p1180_p0, %s1179_s4), 2 }
 0x4d1   : > { %s1717_s18 = sshll.u32 %s2815_s4, 3 }
 0x4d2   : > { %p1720_p1 = scmp.eq.s32.totalorder %s1717_s18, 0 }
 0x4d3   : > { %s2679_s27 = scalar_lea.vmem %s2802_s16, %s1766_s21   ;;  %s2685_s1 = sshrl.u32 (!%p1720_p1), %s2815_s4, 1 }
 0x4d4   : > { %1188 = sbr.rel (%p1720_p1) target bundleno = 1271 (0x4f7), region = 84  ;;  %p1721_p12 = scmp.le.s32.totalorder (!%p1720_p1), %s2685_s1, 0 }
 0x4d9   : > { %1527 = sbr.rel (%p1721_p12) target bundleno = 1254 (0x4e6), region = 245  ;;  %s2122_s26 = smov (!%p1721_p12), %s2679_s27  }
 0x4da   : > { %s2126_s30 = smov (!%p1721_p12), %s2407_s17   ;;  %s2130_s14 = smov (!%p1721_p12), 0  }
 0x4db   : > { %s2134_s29 = smov (!%p1721_p12), 0  }
 0x4de LB: >> { %v1253_v19 = vld [vmem:[%s2128_s30] sm:$0xff]  ;;  %v1255_v7 = vld [vmem:[%s2128_s30 + $0x8] sm:$0xff]  ;;  %s1257_s2 = sadd.s32 1, %s2132_s14  ;;  %s1247_s29 = sadd.s32 1, %s2136_s29   ;;  %s2136_s29 = sphi %s2134_s29, %s1247_s29   ;;  %s2132_s14 = sphi %s2130_s14, %s2131_s14   ;;  %s2128_s30 = sphi %s2126_s30, %s1262_s30   ;;  %s2124_s26 = sphi %s2122_s26, %s1263_s26  }
 0x4df   : >> { %1254 = vst [vmem:[%s2124_s26] sm:$0xff] %v1253_v19  ;;  %p1258_p2 = scmp.ge.s32.totalorder %s1257_s2, %s2685_s1  ;;  %p1246_p3 = scmp.ge.s32.totalorder %s1247_s29, %s2685_s1 }
 0x4e0   : >> { %1256 = vst [vmem:[%s2124_s26 + $0x8] sm:$0xff] %v1255_v7 }
 0x4e1   : >> { %s2817_s2 = smov (%p1258_p2, %s1257_s2), 0  ;;  %1249 = sbr.rel (!%p1246_p3) target bundleno = 1246 (0x4de), region = 251 }
 0x4e2   : >> { %s1722_s3 = sshll.u32 %s2817_s2, 4  ;;  %s2131_s14 = smov %s2817_s2  }
 0x4e3   : >> { %s1262_s30 = scalar_lea.vmem %s2407_s17, %s1722_s3 [#allocation4]   ;;  %s1263_s26 = scalar_lea.vmem %s2679_s27, %s1722_s3  }
 0x4e6 PF: > { %s2695_s15 = sand.u32 1, %s2815_s4   ;;  %s1767_s23 = sshll.u32 %s2685_s1, 4 }
 0x4e7   : > { %s1268_s21 = scalar_lea.vmem %s2407_s17, %s1767_s23 [#allocation4]   ;;  %s1270_s0 = scalar_lea.vmem %s2679_s27, %s1767_s23  }
 0x4e8   : > { %p1727_p4 = scmp.le.s32.totalorder %s2695_s15, 0 }
 0x4e9   : > { %s2138_s20 = smov (!%p1727_p4), %s1270_s0   ;;  %s2142_s16 = smov (!%p1727_p4), %s1268_s21  }
 0x4ea   : > { %1541 = sbr.rel (%p1727_p4) target bundleno = 1271 (0x4f7), region = 256  ;;  %s2146_s18 = smov (!%p1727_p4), 0  }
 0x4eb   : > { %s2150_s26 = smov (!%p1727_p4), 0  }
 0x4ef LB: >> { %v1280_v8 = vld [vmem:[%s2144_s16] sm:$0xff]  ;;  %s1282_s4 = sadd.s32 1, %s2148_s18  ;;  %s1274_s26 = sadd.s32 1, %s2152_s26   ;;  %s2152_s26 = sphi %s2150_s26, %s1274_s26   ;;  %s2148_s18 = sphi %s2146_s18, %s2147_s18   ;;  %s2144_s16 = sphi %s2142_s16, %s1287_s16   ;;  %s2140_s20 = sphi %s2138_s20, %s1288_s20  }
 0x4f0   : >> { %1281 = vst [vmem:[%s2140_s20] sm:$0xff] %v1280_v8  ;;  %p1283_p7 = scmp.ge.s32.totalorder %s1282_s4, %s2695_s15  ;;  %p1273_p8 = scmp.ge.s32.totalorder %s1274_s26, %s2695_s15 }
 0x4f2   : >> { %s2819_s4 = smov (%p1283_p7, %s1282_s4), 0  ;;  %1276 = sbr.rel (!%p1273_p8) target bundleno = 1263 (0x4ef), region = 262 }
 0x4f3   : >> { %s1728_s17 = sshll.u32 %s2819_s4, 3  ;;  %s2147_s18 = smov %s2819_s4  }
 0x4f4   : >> { %s1287_s16 = scalar_lea.vmem %s1268_s21, %s1728_s17 [#allocation4]   ;;  %s1288_s20 = scalar_lea.vmem %s1270_s0, %s1728_s17  }
 0x4f7 PF: > { %1294 = sbr.rel (!%p2307_p5) target bundleno = 1315 (0x523), region = 132  ;;  %s1296_s27 = ssub.s32 (%p2307_p5), 7, %s2324_s25 }
 0x4f8   : > { %s1769_s1 = sshll.u32 (%p2307_p5), %s2290_s22, 4  ;;  %p1297_p9 = scmp.lt.s32.totalorder (%p2307_p5), %s1296_s27, 2 }
 0x4f9   : > { %s2803_s29 = sld [smem:[#allocation19_spill]] (%p2307_p5) }
 0x4fc   : > { %s2821_s27 = smov (!%p1297_p9, %s1296_s27), 2 }
 0x4fd   : > { %s1731_s3 = sshll.u32 %s2821_s27, 3 }
 0x4fe   : > { %p1734_p10 = scmp.eq.s32.totalorder %s1731_s3, 0 }
 0x4ff   : > { %s2710_s2 = scalar_lea.vmem %s2803_s29, %s1769_s1   ;;  %s2716_s15 = sshrl.u32 (!%p1734_p10), %s2821_s27, 1 }
 0x500   : > { %1305 = sbr.rel (%p1734_p10) target bundleno = 1315 (0x523), region = 136  ;;  %p1735_p5 = scmp.le.s32.totalorder (!%p1734_p10), %s2716_s15, 0 }
 0x505   : > { %1555 = sbr.rel (%p1735_p5) target bundleno = 1298 (0x512), region = 267  ;;  %s2154_s22 = smov (!%p1735_p5), %s2710_s2  }
 0x506   : > { %s2158_s28 = smov (!%p1735_p5), %s2621_s24   ;;  %s2162_s25 = smov (!%p1735_p5), 0  }
 0x507   : > { %s2166_s23 = smov (!%p1735_p5), 0  }
 0x50a LB: >> { %v1370_v9 = vld [vmem:[%s2160_s28] sm:$0xff]  ;;  %v1372_v10 = vld [vmem:[%s2160_s28 + $0x8] sm:$0xff]  ;;  %s1374_s21 = sadd.s32 1, %s2164_s25  ;;  %s1364_s23 = sadd.s32 1, %s2168_s23   ;;  %s2168_s23 = sphi %s2166_s23, %s1364_s23   ;;  %s2164_s25 = sphi %s2162_s25, %s2163_s25   ;;  %s2160_s28 = sphi %s2158_s28, %s1379_s28   ;;  %s2156_s22 = sphi %s2154_s22, %s1380_s22  }
 0x50b   : >> { %1371 = vst [vmem:[%s2156_s22] sm:$0xff] %v1370_v9  ;;  %p1375_p11 = scmp.ge.s32.totalorder %s1374_s21, %s2716_s15  ;;  %p1363_p13 = scmp.ge.s32.totalorder %s1364_s23, %s2716_s15 }
 0x50c   : >> { %1373 = vst [vmem:[%s2156_s22 + $0x8] sm:$0xff] %v1372_v10 }
 0x50d   : >> { %s2823_s21 = smov (%p1375_p11, %s1374_s21), 0  ;;  %1366 = sbr.rel (!%p1363_p13) target bundleno = 1290 (0x50a), region = 273 }
 0x50e   : >> { %s1736_s0 = sshll.u32 %s2823_s21, 4  ;;  %s2163_s25 = smov %s2823_s21  }
 0x50f   : >> { %s1379_s28 = scalar_lea.vmem %s2621_s24, %s1736_s0 [#allocation5]   ;;  %s1380_s22 = scalar_lea.vmem %s2710_s2, %s1736_s0  }
 0x512 PF: > { %s2726_s20 = sand.u32 1, %s2821_s27   ;;  %s1770_s16 = sshll.u32 %s2716_s15, 4 }
 0x513   : > { %s1385_s18 = scalar_lea.vmem %s2621_s24, %s1770_s16 [#allocation5]   ;;  %s1387_s26 = scalar_lea.vmem %s2710_s2, %s1770_s16  }
 0x514   : > { %p1741_p0 = scmp.le.s32.totalorder %s2726_s20, 0 }
 0x515   : > { %s2170_s4 = smov (!%p1741_p0), %s1387_s26   ;;  %s2174_s17 = smov (!%p1741_p0), %s1385_s18  }
 0x516   : > { %1569 = sbr.rel (%p1741_p0) target bundleno = 1315 (0x523), region = 278  ;;  %s2178_s1 = smov (!%p1741_p0), 0  }
 0x517   : > { %s2182_s30 = smov (!%p1741_p0), 0  }
 0x51b LB: >> { %v1397_v11 = vld [vmem:[%s2176_s17] sm:$0xff]  ;;  %s1399_s27 = sadd.s32 1, %s2180_s1  ;;  %s1391_s30 = sadd.s32 1, %s2184_s30   ;;  %s2184_s30 = sphi %s2182_s30, %s1391_s30   ;;  %s2180_s1 = sphi %s2178_s1, %s2179_s1   ;;  %s2176_s17 = sphi %s2174_s17, %s1404_s17   ;;  %s2172_s4 = sphi %s2170_s4, %s1405_s4  }
 0x51c   : >> { %1398 = vst [vmem:[%s2172_s4] sm:$0xff] %v1397_v11  ;;  %p1400_p1 = scmp.ge.s32.totalorder %s1399_s27, %s2726_s20  ;;  %p1390_p12 = scmp.ge.s32.totalorder %s1391_s30, %s2726_s20 }
 0x51e   : >> { %s2825_s27 = smov (%p1400_p1, %s1399_s27), 0  ;;  %1393 = sbr.rel (!%p1390_p12) target bundleno = 1307 (0x51b), region = 284 }
 0x51f   : >> { %s1742_s24 = sshll.u32 %s2825_s27, 3  ;;  %s2179_s1 = smov %s2825_s27  }
 0x520   : >> { %s1404_s17 = scalar_lea.vmem %s1385_s18, %s1742_s24 [#allocation5]   ;;  %s1405_s4 = scalar_lea.vmem %s1387_s26, %s1742_s24  }
 0x523 PF: > { %s2804_s14 = sld [smem:[#allocation9_spill]] }
 0x524   : > { %s2805_s29 = sld [smem:[#allocation7_spill]] }
 0x529   : > { %p1779_p2 = scmp.ge.s32.totalorder %s2804_s14, 2 }
 0x52a   : > { %s1417_s3 = sand.u32 1, %s2805_s29  }
 0x52b   : > { %p1776_p3 = pnand %p1779_p2, %p2311_p6  ;;  %s1418_s15 = scalar_lea.sflag [#allocation3], %s1417_s3 }
 0x52d   : > { %p1777_p4 = pneg %p1776_p3 }
 0x52f   : > { %2103 = dma.done.wait (%p1777_p4), %s1418_s15, 512  }
 0x530   : > { %2105 = vsyncadd (%p1777_p4), %s1418_s15, 4294966784  ;;  %s2807_s21 = sld [smem:[#allocation10_spill]]  ;;  %s2810_s18 = smov %s2112_s19 }
 0x531   : > { %s2808_s22 = sld [smem:[#allocation8_spill]] }
 0x532   : > { %s2809_s20 = sld [smem:[#allocation11_spill]] }
 0x536   : > { %p26_p7 = scmp.ge.s32.totalorder %s2807_s21, 6  }
 0x537   : > { %s2811_s19 = smov %s2808_s22 }
 0x538   :  { %28 = sbr.rel (!%p26_p7) target bundleno = 11 (0xb), region = 295 }
 0x53d   :  { %1438 = vsyncpa [#allocation3], 1 }
 0x53e   :  { %1440 = vsyncpa [#allocation3 + $0x1], 1 }

</bundles_post_ra>
